<compile_context>
chip_gen: v6e
topology: v6e:2x2x1
jax: 0.10.0
libtpu: 0.0.40
codegen_flags: <defaults>
</compile_context>

<pallas_src>
import functools

import jax
import jax.numpy as jnp
from jax.experimental import pallas as pl
from jax.experimental.pallas import tpu as pltpu


def _round_up(x, m):
    return ((x + m - 1) // m) * m


def _vmem_budget_bytes():
    """Per-generation scoped-VMEM budget: ~3/4 of physical, capped at 100 MiB
    (v5e/v6e: ~96 MiB of 128 MiB; v7x: ~48 MiB of 64 MiB)."""
    try:
        info = pltpu.get_tpu_info()
        phys = int(getattr(info, "vmem_capacity_bytes", 64 << 20))
    except Exception:
        phys = 64 << 20  # conservative (v7x-like) fallback
    return min((phys * 3) // 4, 100 << 20)


# --------------------------------------------------------------------------
# Kernels
# --------------------------------------------------------------------------
def _patch_embed_kernel_single_k(x_ref, w_ref, b_ref, o_ref):
    # Resident-W fast path: the whole (padded) K fits one tile, so there is no
    # accumulator scratch, no pl.when phases, and no epilogue copy.
    o_ref[...] = (
        jnp.dot(x_ref[...], w_ref[...], preferred_element_type=jnp.float32)
        + b_ref[...]
    ).astype(o_ref.dtype)


def _patch_embed_kernel_multi_k(x_ref, w_ref, b_ref, o_ref, acc_ref):
    # Fallback for very large K*D: K-tiled reduction with an f32 accumulator.
    k = pl.program_id(1)

    @pl.when(k == 0)
    def _init():
        acc_ref[...] = jnp.zeros_like(acc_ref)

    acc_ref[...] += jnp.dot(
        x_ref[...], w_ref[...], preferred_element_type=jnp.float32
    )

    @pl.when(k == pl.num_programs(1) - 1)
    def _epilogue():
        o_ref[...] = (acc_ref[...] + b_ref[...]).astype(o_ref.dtype)


# --------------------------------------------------------------------------
# Tiled GEMM + bias
# --------------------------------------------------------------------------
def _tiled_gemm_bias(xp, w_mat, bias, out_dtype):
    """out[M, D] = xp[M, K] @ w_mat[K, D] + bias[D]."""
    M, K = xp.shape
    D = w_mat.shape[1]
    K_pad = _round_up(K, 128)
    D_pad = _round_up(D, 128)

    item = jnp.dtype(xp.dtype).itemsize
    out_item = jnp.dtype(out_dtype).itemsize
    tm_base = 16 if item < 4 else 8  # bf16 sublane packing wants multiples of 16

    vmem_budget = _vmem_budget_bytes()

    # Only W / bias are padded (tiny).  X is padded along K only when K is not
    # lane-aligned (the zero K-pad keeps the reduction exact); partial M blocks
    # need no padding because out-of-bounds output stores are masked.
    if K_pad != K:
        xp = jnp.pad(xp, ((0, 0), (0, K_pad - K)))
    w_p = jnp.pad(w_mat, ((0, K_pad - K), (0, D_pad - D)))
    bias_row = jnp.pad(bias.astype(jnp.float32), (0, D_pad - D)).reshape(1, D_pad)

    TN = D_pad  # d_model is modest for this module -> single lane-dense N tile
    # TODO(synk): add an N grid axis (TN=256..512, "parallel") if d_model grows past ~1024.

    w_bytes = K_pad * TN * item
    # Keep W VMEM-resident (constant block index -> DMA'd once) when it fits.
    resident_w = 2 * w_bytes <= min(vmem_budget // 2, 32 << 20)

    cost = pl.CostEstimate(
        flops=2 * M * K_pad * D_pad,
        transcendentals=0,
        bytes_accessed=(
            M * K_pad * item + K_pad * D_pad * item + M * D_pad * out_item
        ),
    )

    if resident_w:
        TK = K_pad
        fixed = 2 * w_bytes + 2 * D_pad * 4  # W (budget 2 bufs) + bias
        TM = min(1024, _round_up(M, tm_base))
        while TM > tm_base:
            per_tile = 2 * TM * TK * item + 2 * TM * TN * out_item
            if fixed + per_tile + (2 << 20) <= vmem_budget:
                break
            TM = max(tm_base, _round_up(TM // 2, tm_base))
        vmem_est = fixed + 2 * TM * TK * item + 2 * TM * TN * out_item
        vmem_limit = int(min(vmem_budget, max(vmem_est + (8 << 20), 32 << 20)))

        out = pl.pallas_call(
            _patch_embed_kernel_single_k,
            out_shape=jax.ShapeDtypeStruct((M, D_pad), out_dtype),
            grid_spec=pltpu.PrefetchScalarGridSpec(
                num_scalar_prefetch=0,
                grid=(pl.cdiv(M, TM),),
                in_specs=[
                    pl.BlockSpec((TM, TK), lambda m: (m, 0)),
                    pl.BlockSpec((TK, TN), lambda m: (0, 0)),  # constant -> fetched once
                    pl.BlockSpec((1, TN), lambda m: (0, 0)),
                ],
                out_specs=pl.BlockSpec((TM, TN), lambda m: (m, 0)),
            ),
            compiler_params=pltpu.CompilerParams(
                dimension_semantics=("parallel",),
                vmem_limit_bytes=vmem_limit,
            ),
            cost_estimate=cost,
        )(xp, w_p, bias_row)
    else:
        # K-tiled fallback for very large K*D.
        tk_target = 2048 if item < 4 else 1024
        TK = min(K_pad, tk_target)
        TK -= TK % 128
        while K_pad % TK != 0:  # exact K blocks: no garbage enters the reduction
            TK -= 128
        fixed = 2 * TK * TN * item + 2 * D_pad * 4
        TM = min(512, _round_up(M, tm_base))
        while TM > tm_base:
            per_tile = 2 * TM * TK * item + 2 * TM * TN * out_item + TM * TN * 4
            if fixed + per_tile + (2 << 20) <= vmem_budget:
                break
            TM = max(tm_base, _round_up(TM // 2, tm_base))
        vmem_est = fixed + 2 * TM * TK * item + 2 * TM * TN * out_item + TM * TN * 4
        vmem_limit = int(min(vmem_budget, max(vmem_est + (8 << 20), 32 << 20)))

        out = pl.pallas_call(
            _patch_embed_kernel_multi_k,
            out_shape=jax.ShapeDtypeStruct((M, D_pad), out_dtype),
            grid_spec=pltpu.PrefetchScalarGridSpec(
                num_scalar_prefetch=0,
                grid=(pl.cdiv(M, TM), K_pad // TK),
                in_specs=[
                    pl.BlockSpec((TM, TK), lambda m, k: (m, k)),
                    pl.BlockSpec((TK, TN), lambda m, k: (k, 0)),
                    pl.BlockSpec((1, TN), lambda m, k: (0, 0)),
                ],
                out_specs=pl.BlockSpec((TM, TN), lambda m, k: (m, 0)),
                scratch_shapes=[pltpu.VMEM((TM, TN), jnp.float32)],
            ),
            compiler_params=pltpu.CompilerParams(
                dimension_semantics=("parallel", "arbitrary"),
                vmem_limit_bytes=vmem_limit,
            ),
            cost_estimate=cost,
        )(xp, w_p, bias_row)

    return out if D == D_pad else out[:, :D]


# --------------------------------------------------------------------------
# Wrapper: im2col glue + single batched pallas_call for the whole list
# --------------------------------------------------------------------------
def _extract_patches(x, p):
    """(B, C, H, W) NCHW -> (B*Hp*Wp, C*p*p), rows ordered (b, hp, wp)."""
    B, C, H, W = x.shape
    Hp, Wp = H // p, W // p
    return (
        x.reshape(B, C, Hp, p, Wp, p)
        .transpose(0, 2, 4, 1, 3, 5)
        .reshape(B * Hp * Wp, C * p * p)
    )


@functools.partial(jax.jit, static_argnames=("patch_size", "compute_dtype"))
def _tmae_patching2_impl(input_list, weight, bias, patch_size, compute_dtype):
    p = patch_size
    D_out, D_in, kh, kw = weight.shape
    K = D_in * p * p

    out_dtype = input_list[0].dtype
    dot_dtype = jnp.dtype(compute_dtype) if compute_dtype is not None else out_dtype

    # Conv weight (O, C, kh, kw) -> (K, O); column order (c, ph, pw) matches
    # the patch flattening.  Done once per call (tiny vs. activations).
    w_mat = weight.reshape(D_out, K).T.astype(dot_dtype)

    # Batch every list entry into a single GEMM (one pallas_call launch).
    # The dot-dtype cast is fused into the im2col relayout.
    xps, metas = [], []
    for x in input_list:
        B, _, H, W = x.shape
        Hp, Wp = H // p, W // p
        xps.append(_extract_patches(x, p).astype(dot_dtype))
        metas.append((B, Hp, Wp))

    xp_all = jnp.concatenate(xps, axis=0) if len(xps) > 1 else xps[0]
    out_all = _tiled_gemm_bias(xp_all, w_mat, bias, out_dtype)

    outs, off = [], 0
    for B, Hp, Wp in metas:
        m = B * Hp * Wp
        outs.append(out_all[off:off + m].reshape(B, Hp * Wp, D_out))
        off += m
    return outs


def tmae_patching2(input_list, weight, bias, patch_size, compute_dtype=None):
    """Forward pass of TMAE_patching2.

    input_list: list of NCHW arrays (B, d_model, H, W)
    weight:     (d_model, d_model, patch_size, patch_size)  Conv2d weight
    bias:       (d_model,)
    compute_dtype: optional GEMM input dtype (e.g. jnp.bfloat16 on v6e/v7x);
                   accumulation and bias add stay in f32.
    Returns a list of arrays (B, (H/p)*(W/p), d_model).
    """
    assert weight.shape[2] == patch_size and weight.shape[3] == patch_size
    return _tmae_patching2_impl(
        list(input_list), weight, bias,
        patch_size=patch_size, compute_dtype=compute_dtype,
    )


# --------------------------------------------------------------------------
# Pure-JAX reference (lax conv, NCHW, stride = kernel = patch)
# --------------------------------------------------------------------------
def _reference_single(x, weight, bias, patch_size):
    y = jax.lax.conv_general_dilated(
        x,
        weight,
        window_strides=(patch_size, patch_size),
        padding="VALID",
        dimension_numbers=("NCHW", "OIHW", "NCHW"),
    ) + bias.reshape(1, -1, 1, 1)
    B, D, Hp, Wp = y.shape
    return y.transpose(0, 2, 3, 1).reshape(B, Hp * Wp, D)  # 'B D H W -> B (H W) D'


if __name__ == "__main__":
    d_model = 8
    patch_size = 4
    batch = 2

    key = jax.random.PRNGKey(0)
    k_w, k_b, k_x1, k_x2 = jax.random.split(key, 4)

    # Deterministic parameter init (Conv2d-like uniform bound).
    fan_in = d_model * patch_size * patch_size
    bound = 1.0 / (fan_in ** 0.5)
    weight = jax.random.uniform(
        k_w, (d_model, d_model, patch_size, patch_size),
        minval=-bound, maxval=bound, dtype=jnp.float32)
    bias = jax.random.uniform(
        k_b, (d_model,), minval=-bound, maxval=bound, dtype=jnp.float32)

    # List of two inputs with different spatial sizes (like the PyTorch list API).
    x1 = jax.random.normal(k_x1, (batch, d_model, 16, 16), dtype=jnp.float32)
    x2 = jax.random.normal(k_x2, (batch, d_model, 8, 8), dtype=jnp.float32)
    input_list = [x1, x2]

    outs = tmae_patching2(input_list, weight, bias, patch_size)
    outs = [jax.block_until_ready(o) for o in outs]

    # Sanity-check against the pure-JAX conv reference (tolerance covers the
    # possibility of XLA's conv using reduced-precision f32 matmul passes).
    for x, o in zip(input_list, outs):
        ref = _reference_single(x, weight, bias, patch_size)
        assert o.shape == ref.shape, (o.shape, ref.shape)
        max_err = float(jnp.max(jnp.abs(o - ref)))
        assert jnp.allclose(o, ref, atol=5e-3, rtol=5e-3), f"mismatch, max_err={max_err}"

    print("KERNEL_OK")
</pallas_src>

<mosaic_0001>
module attributes {stable_mosaic.version = 11 : i64} {
  func.func @_patch_embed_kernel_single_k(%arg0: i32, %arg1: memref<40x128xf32, #tpu.memory_space<vmem>>, %arg2: memref<128x128xf32, #tpu.memory_space<vmem>>, %arg3: memref<1x128xf32, #tpu.memory_space<vmem>>, %arg4: memref<40x128xf32, #tpu.memory_space<vmem>>) attributes {dimension_semantics = [#tpu.dimension_semantics<parallel>], iteration_bounds = array<i64: 1>, scalar_prefetch = 0 : i64, scratch_operands = 0 : i64, tpu.core_type = #tpu.core_type<tc>, window_params = [{transform_indices = @transform_0, window_bounds = array<i64: 40, 128>}, {pipeline_mode = #tpu.pipeline_mode<synchronous>, transform_indices = @transform_1, window_bounds = array<i64: 128, 128>}, {pipeline_mode = #tpu.pipeline_mode<synchronous>, transform_indices = @transform_2, window_bounds = array<i64: 1, 128>}, {transform_indices = @transform_3, window_bounds = array<i64: 40, 128>}]} {
    %c0 = arith.constant 0 : index
    %c0_0 = arith.constant 0 : index
    %0 = vector.load %arg1[%c0, %c0_0] : memref<40x128xf32, #tpu.memory_space<vmem>>, vector<40x128xf32>
    %c0_1 = arith.constant 0 : index
    %c0_2 = arith.constant 0 : index
    %1 = vector.load %arg2[%c0_1, %c0_2] : memref<128x128xf32, #tpu.memory_space<vmem>>, vector<128x128xf32>
    %cst = arith.constant dense<0.000000e+00> : vector<40x128xf32>
    %2 = tpu.matmul %0, %1, %cst {dimension_numbers = #tpu.dot_dimension_numbers<[1], [0], [0], [1], [0, 0, 1, 1], [], []>} : vector<40x128xf32>, vector<128x128xf32>, vector<40x128xf32> -> vector<40x128xf32>
    %c0_3 = arith.constant 0 : index
    %c0_4 = arith.constant 0 : index
    %3 = vector.load %arg3[%c0_3, %c0_4] : memref<1x128xf32, #tpu.memory_space<vmem>>, vector<1x128xf32>
    %4 = vector.broadcast %3 : vector<1x128xf32> to vector<40x128xf32>
    %5 = arith.addf %2, %4 : vector<40x128xf32>
    %c0_5 = arith.constant 0 : index
    %c0_6 = arith.constant 0 : index
    %6 = vector.load %arg4[%c0_5, %c0_6] : memref<40x128xf32, #tpu.memory_space<vmem>>, vector<40x128xf32>
    tpu.vector_store %arg4[%c0_5, %c0_6], %5 {strides = array<i32>} : memref<40x128xf32, #tpu.memory_space<vmem>>, vector<40x128xf32>,
    return
  }
  func.func @transform_0(%arg0: i32) -> (i32, i32) {
    %c0_i32 = arith.constant 0 : i32
    %c0_i32_0 = arith.constant 0 : i32
    return %arg0, %c0_i32 : i32, i32
  }
  func.func @transform_1(%arg0: i32) -> (i32, i32) {
    %c0_i32 = arith.constant 0 : i32
    %c0_i32_0 = arith.constant 0 : i32
    %c0_i32_1 = arith.constant 0 : i32
    return %c0_i32, %c0_i32_0 : i32, i32
  }
  func.func @transform_2(%arg0: i32) -> (i32, i32) {
    %c0_i32 = arith.constant 0 : i32
    %c0_i32_0 = arith.constant 0 : i32
    %c0_i32_1 = arith.constant 0 : i32
    return %c0_i32, %c0_i32_0 : i32, i32
  }
  func.func @transform_3(%arg0: i32) -> (i32, i32) {
    %c0_i32 = arith.constant 0 : i32
    %c0_i32_0 = arith.constant 0 : i32
    return %arg0, %c0_i32 : i32, i32
  }
}

</mosaic_0001>

<bundles_post_ra>
// kernel: _tmae_patching2_impl.1
= control target key start
LH: loop header
LB: loop body
LE: loop exit
PB: predicated region body
PF: predicated region fallthrough
CT: control target
= control target key end

     0   :  { %v244_v0 = vmov 0.0   ;;  %vm245_vm0 = vmmov 0   ;;  %s384_s1 = inlined_call_operand.vmem [shape: f32[128,128], index: 1, kind: input, shape index: {}]   ;;  %s385_s0 = inlined_call_operand.vmem [shape: f32[40,128], index: 0, kind: input, shape index: {}]   ;;  %s386_s2 = inlined_call_operand.vmem [shape: f32[1,128], index: 2, kind: input, shape index: {}]   ;;  %s387_s3 = inlined_call_operand.vmem [shape: f32[40,128], index: 3, kind: output, shape index: {}]  }
   0x1   :  { %163 = vmatprep.subr.mxu0 %v244_v0  ;;  %v34_v1 = vld [vmem:[%s384_s1 + $0x78] sm:$0xff]  ;;  %210 = vmatprep.subr.mxu1 %v244_v0  ;;  %v33_v2 = vld [vmem:[%s384_s1 + $0x70] sm:$0xff]  ;;  %v32_v3 = vld [vmem:[%s384_s1 + $0x68] sm:$0xff] }
   0x2   :  { %164 = vmatpush3.msra.mxu0 %v34_v1  ;;  %226 = vmatpush3.msra.mxu1 %v34_v1  ;;  %v31_v4 = vld [vmem:[%s384_s1 + $0x60] sm:$0xff]  ;;  %v30_v5 = vld [vmem:[%s384_s1 + $0x58] sm:$0xff]  ;;  %v29_v6 = vld [vmem:[%s384_s1 + $0x50] sm:$0xff] }
   0x3   :  { %165 = vmatprep.subr.mxu0 %v244_v0  ;;  %211 = vmatprep.subr.mxu1 %v244_v0  ;;  %v28_v7 = vld [vmem:[%s384_s1 + $0x48] sm:$0xff]  ;;  %v27_v8 = vld [vmem:[%s384_s1 + $0x40] sm:$0xff]  ;;  %v26_v9 = vld [vmem:[%s384_s1 + $0x38] sm:$0xff] }
   0x4   :  { %166 = vmatpush3.msra.mxu0 %v33_v2  ;;  %227 = vmatpush3.msra.mxu1 %v33_v2  ;;  %v25_v10 = vld [vmem:[%s384_s1 + $0x30] sm:$0xff]  ;;  %v24_v11 = vld [vmem:[%s384_s1 + $0x28] sm:$0xff]  ;;  %v23_v12 = vld [vmem:[%s384_s1 + $0x20] sm:$0xff] }
   0x5   :  { %167 = vmatprep.subr.mxu0 %v244_v0  ;;  %212 = vmatprep.subr.mxu1 %v244_v0  ;;  %v22_v13 = vld [vmem:[%s384_s1 + $0x18] sm:$0xff]  ;;  %v21_v14 = vld [vmem:[%s384_s1 + $0x10] sm:$0xff]  ;;  %v20_v15 = vld [vmem:[%s384_s1 + $0x8] sm:$0xff] }
   0x6   :  { %168 = vmatpush3.msra.mxu0 %v32_v3  ;;  %228 = vmatpush3.msra.mxu1 %v32_v3  ;;  %v19_v16 = vld [vmem:[%s384_s1] sm:$0xff]  ;;  %v17_v18 = vld [vmem:[%s385_s0 + $0x18] sm:$0xff]  ;;  %v15_v19 = vld [vmem:[%s385_s0 + $0x8] sm:$0xff] }
   0x7   :  { %169 = vmatprep.subr.mxu0 %v244_v0  ;;  %213 = vmatprep.subr.mxu1 %v244_v0  ;;  %v14_v17 = vld [vmem:[%s385_s0] sm:$0xff]  ;;  %v16_v21 = vld [vmem:[%s385_s0 + $0x10] sm:$0xff] }
   0x8   :  { %170 = vmatpush3.msra.mxu0 %v31_v4  ;;  %229 = vmatpush3.msra.mxu1 %v31_v4  ;;  %v18_v20 = vld [vmem:[%s385_s0 + $0x20] sm:$0xff] }
   0x9   :  { %171 = vmatprep.subr.mxu0 %v244_v0  ;;  %214 = vmatprep.subr.mxu1 %v244_v0  ;;  %v141_v22 = vld [vmem:[%s386_s2] ss:$0 sm:$0xff] }
   0xa   :  { %172 = vmatpush3.msra.mxu0 %v30_v5  ;;  %230 = vmatpush3.msra.mxu1 %v30_v5 }
   0xb   :  { %173 = vmatprep.subr.mxu0 %v244_v0  ;;  %215 = vmatprep.subr.mxu1 %v244_v0 }
   0xc   :  { %174 = vmatpush3.msra.mxu0 %v29_v6  ;;  %231 = vmatpush3.msra.mxu1 %v29_v6 }
   0xd   :  { %175 = vmatprep.subr.mxu0 %v244_v0  ;;  %216 = vmatprep.subr.mxu1 %v244_v0 }
   0xe   :  { %176 = vmatpush3.msra.mxu0 %v28_v7  ;;  %232 = vmatpush3.msra.mxu1 %v28_v7 }
   0xf   :  { %177 = vmatprep.subr.mxu0 %v244_v0  ;;  %217 = vmatprep.subr.mxu1 %v244_v0 }
  0x10   :  { %178 = vmatpush3.msra.mxu0 %v27_v8  ;;  %233 = vmatpush3.msra.mxu1 %v27_v8 }
  0x11   :  { %179 = vmatprep.subr.mxu0 %v244_v0  ;;  %218 = vmatprep.subr.mxu1 %v244_v0 }
  0x12   :  { %180 = vmatpush3.msra.mxu0 %v26_v9  ;;  %234 = vmatpush3.msra.mxu1 %v26_v9 }
  0x13   :  { %181 = vmatprep.subr.mxu0 %v244_v0  ;;  %219 = vmatprep.subr.mxu1 %v244_v0 }
  0x14   :  { %182 = vmatpush3.msra.mxu0 %v25_v10  ;;  %235 = vmatpush3.msra.mxu1 %v25_v10 }
  0x15   :  { %183 = vmatprep.subr.mxu0 %v244_v0  ;;  %220 = vmatprep.subr.mxu1 %v244_v0 }
  0x16   :  { %184 = vmatpush3.msra.mxu0 %v24_v11  ;;  %236 = vmatpush3.msra.mxu1 %v24_v11 }
  0x17   :  { %185 = vmatprep.subr.mxu0 %v244_v0  ;;  %221 = vmatprep.subr.mxu1 %v244_v0 }
  0x18   :  { %186 = vmatpush3.msra.mxu0 %v23_v12  ;;  %237 = vmatpush3.msra.mxu1 %v23_v12 }
  0x19   :  { %187 = vmatprep.subr.mxu0 %v244_v0  ;;  %222 = vmatprep.subr.mxu1 %v244_v0 }
  0x1a   :  { %188 = vmatpush3.msra.mxu0 %v22_v13  ;;  %238 = vmatpush3.msra.mxu1 %v22_v13 }
  0x1b   :  { %189 = vmatprep.subr.mxu0 %v244_v0  ;;  %223 = vmatprep.subr.mxu1 %v244_v0 }
  0x1c   :  { %190 = vmatpush3.msra.mxu0 %v21_v14  ;;  %239 = vmatpush3.msra.mxu1 %v21_v14 }
  0x1d   :  { %191 = vmatprep.subr.mxu0 %v244_v0  ;;  %224 = vmatprep.subr.mxu1 %v244_v0 }
  0x1e   :  { %192 = vmatpush3.msra.mxu0 %v20_v15  ;;  %240 = vmatpush3.msra.mxu1 %v20_v15 }
  0x1f   :  { %193 = vmatprep.subr.mxu0 %v244_v0  ;;  %195 = vmatprep.mubr.msk.f32.mxu0 %vm245_vm0, %v244_v0 }
  0x20   :  { %194 = vmatpush3.msra.mxu0 %v19_v16  ;;  %225 = vmatprep.subr.mxu1 %v244_v0 }
  0x21   :  { %196 = vmatmul.mubr.f32.vlgmr.msra.gmra.mxu0 %v14_v17  ;;  %241 = vmatpush3.msra.mxu1 %v19_v16 }
  0x22   :  { %204 = vmatprep.mubr.msk.f32.mxu1 %vm245_vm0, %v244_v0  ;;  %198 = vmatprep.mubr.msk.f32.mxu0 %vm245_vm0, %v244_v0 }
  0x23   :  { %205 = vmatmul.mubr.f32.vlgmr.msra.gmra.mxu1 %v17_v18 }
  0x24   :  { %207 = vmatprep.mubr.msk.f32.mxu1 %vm245_vm0, %v244_v0 }
  0x25   :  { %199 = vmatmul.mubr.f32.gmra.mxu0 %v15_v19 }
  0x26   :  { %201 = vmatprep.mubr.msk.f32.mxu0 %vm245_vm0, %v244_v0 }
  0x27   :  { %208 = vmatmul.mubr.f32.gmra.mxu1 %v18_v20 }
  0x29   :  { %202 = vmatmul.mubr.f32.gmra.mxu0 %v16_v21 }
  0xe1   :  { %v108_v23 = vpop.f32.mrf.mxu0 }
  0xe2   :  { %v109_v24 = vadd.f32 %v141_v22, %v108_v23 }
  0xe3   :  { %v197_v25 = vpop.f32.mrf.mxu0  ;;  %v123_v26 = vpop.f32.mrf.mxu1 }
  0xe4   :  { %132 = vst [vmem:[%s387_s3] sm:$0xff] %v109_v24  ;;  %v124_v27 = vadd.f32 %v141_v22, %v123_v26 }
  0xe5   :  { %v113_v28 = vpop.f32.mrf.mxu0  ;;  %v206_v29 = vpop.f32.mrf.mxu1 }
  0xe6   :  { %135 = vst [vmem:[%s387_s3 + $0x18] sm:$0xff] %v124_v27  ;;  %v114_v30 = vadd.f32 %v141_v22, %v113_v28 }
  0xe7   :  { %v200_v31 = vpop.f32.mrf.mxu0  ;;  %v128_v32 = vpop.f32.mrf.mxu1 }
  0xe8   :  { %133 = vst [vmem:[%s387_s3 + $0x8] sm:$0xff] %v114_v30  ;;  %v129_v33 = vadd.f32 %v141_v22, %v128_v32 }
  0xe9   :  { %v118_v34 = vpop.f32.mrf.mxu0  ;;  %v209_v35 = vpop.f32.mrf.mxu1 }
  0xea   :  { %136 = vst [vmem:[%s387_s3 + $0x20] sm:$0xff] %v129_v33  ;;  %v119_v36 = vadd.f32 %v141_v22, %v118_v34 }
  0xeb   :  { %v203_v37 = vpop.f32.mrf.mxu0 }
  0xec   :  { %134 = vst [vmem:[%s387_s3 + $0x10] sm:$0xff] %v119_v36 }

</bundles_post_ra>
